<compile_context>
chip_gen: v7x
topology: tpu7x:2x2x1
jax: 0.10.0
libtpu: 0.0.40
codegen_flags: <defaults>
</compile_context>

<pallas_src>
import functools

import jax
import jax.numpy as jnp
from jax.experimental import pallas as pl
from jax.experimental.pallas import tpu as pltpu


def _fda_kernel(*refs, has_bias):
    if has_bias:
        x_ref, w_ref, b_ref, o_ref, acc_ref = refs
    else:
        x_ref, w_ref, o_ref, acc_ref = refs
        b_ref = None

    k = pl.program_id(2)

    @pl.when(k == 0)
    def _init():
        acc_ref[...] = jnp.zeros_like(acc_ref)

    # Weight tile was pre-binarized ({-1, 0, +1}) and stored as bf16; cast to
    # the activation dtype (exact for these values) so MXU operands match.
    w_tile = w_ref[...].astype(x_ref.dtype)
    acc_ref[...] += jnp.dot(x_ref[...], w_tile,
                            preferred_element_type=jnp.float32)

    @pl.when(k == pl.num_programs(2) - 1)
    def _finalize():
        acc = acc_ref[...]
        if has_bias:
            acc = acc + b_ref[...].astype(jnp.float32)
        o_ref[...] = acc.astype(o_ref.dtype)


def _round_up(a, b):
    return (a + b - 1) // b * b


def fda_binary_linear(x, weight, bias=None, *, tm_max=256, tn_max=256, tk_max=512):
    """y = x @ sign(weight).T + bias  (semantics of FdaBinaryLinear.forward)."""
    orig_shape = x.shape
    K = orig_shape[-1]
    N, Kw = weight.shape
    assert Kw == K, "weight must be [out_features, in_features]"

    M = 1
    for d in orig_shape[:-1]:
        M *= d

    out_dtype = jnp.promote_types(x.dtype, jnp.float32)

    # --- host-side prep: binarize once, transpose to [K, N], store bf16 ---
    w_t = jnp.sign(weight.astype(jnp.float32)).T.astype(jnp.bfloat16)  # [K, N]

    # --- tile sizes (MXU / lane friendly, clamped for small problems) ---
    tm = min(tm_max, _round_up(M, 8))     # sublane-aligned
    tn = min(tn_max, _round_up(N, 128))   # lane-dense output
    tk = min(tk_max, _round_up(K, 128))   # lane-dense contraction

    Mp, Np, Kp = _round_up(M, tm), _round_up(N, tn), _round_up(K, tk)

    x2 = x.reshape(M, K)
    if (Mp, Kp) != (M, K):
        x2 = jnp.pad(x2, ((0, Mp - M), (0, Kp - K)))
    if (Kp, Np) != (K, N):
        w_t = jnp.pad(w_t, ((0, Kp - K), (0, Np - N)))

    has_bias = bias is not None
    args = [x2, w_t]
    in_specs = [
        pl.BlockSpec((tm, tk), lambda m, n, k: (m, k)),
        pl.BlockSpec((tk, tn), lambda m, n, k: (k, n)),
    ]
    if has_bias:
        b2 = bias.astype(jnp.float32).reshape(1, N)
        if Np != N:
            b2 = jnp.pad(b2, ((0, 0), (0, Np - N)))
        args.append(b2)
        in_specs.append(pl.BlockSpec((1, tn), lambda m, n, k: (0, n)))

    grid = (Mp // tm, Np // tn, Kp // tk)

    out = pl.pallas_call(
        functools.partial(_fda_kernel, has_bias=has_bias),
        out_shape=jax.ShapeDtypeStruct((Mp, Np), out_dtype),
        grid_spec=pltpu.PrefetchScalarGridSpec(
            num_scalar_prefetch=0,
            grid=grid,
            in_specs=in_specs,
            out_specs=pl.BlockSpec((tm, tn), lambda m, n, k: (m, n)),
            scratch_shapes=[pltpu.VMEM((tm, tn), jnp.float32)],
        ),
        compiler_params=pltpu.CompilerParams(
            dimension_semantics=("parallel", "parallel", "arbitrary"),
        ),
    )(*args)

    out = out[:M, :N]
    return out.reshape(orig_shape[:-1] + (N,))


def _reference(x, weight, bias):
    w = jnp.sign(weight.astype(jnp.float32))
    y = jnp.einsum("...k,nk->...n", x.astype(jnp.float32), w)
    if bias is not None:
        y = y + bias.astype(jnp.float32)
    return y


if __name__ == "__main__":
    key = jax.random.PRNGKey(0)
    k1, k2, k3 = jax.random.split(key, 3)

    # Small but padding-exercising shapes: K and N are not multiples of 128.
    batch, seq, in_features, out_features = 2, 8, 96, 80
    x = jax.random.normal(k1, (batch, seq, in_features), dtype=jnp.float32)
    weight = jax.random.normal(k2, (out_features, in_features), dtype=jnp.float32)
    bias = jax.random.normal(k3, (out_features,), dtype=jnp.float32)

    # with bias
    y = jax.block_until_ready(fda_binary_linear(x, weight, bias))
    y_ref = _reference(x, weight, bias)
    assert y.shape == (batch, seq, out_features)
    assert jnp.allclose(y, y_ref, atol=1e-4, rtol=1e-5)

    # bias=None path (no zero-bias materialization)
    y_nb = jax.block_until_ready(fda_binary_linear(x, weight, None))
    y_nb_ref = _reference(x, weight, None)
    assert jnp.allclose(y_nb, y_nb_ref, atol=1e-4, rtol=1e-5)

    print("KERNEL_OK")
</pallas_src>

<mosaic_0001>
module attributes {stable_mosaic.version = 11 : i64} {
  func.func @_fda_kernel(%arg0: i32, %arg1: i32, %arg2: i32, %arg3: memref<16x128xf32, #tpu.memory_space<vmem>>, %arg4: memref<128x128xbf16, #tpu.memory_space<vmem>>, %arg5: memref<1x128xf32, #tpu.memory_space<vmem>>, %arg6: memref<16x128xf32, #tpu.memory_space<vmem>>, %arg7: memref<16x128xf32, #tpu.memory_space<vmem>>) attributes {dimension_semantics = [#tpu.dimension_semantics<parallel>, #tpu.dimension_semantics<parallel>, #tpu.dimension_semantics<arbitrary>], iteration_bounds = array<i64: 1, 1, 1>, scalar_prefetch = 0 : i64, scratch_operands = 1 : i64, tpu.core_type = #tpu.core_type<tc>, window_params = [{transform_indices = @transform_0, window_bounds = array<i64: 16, 128>}, {transform_indices = @transform_1, window_bounds = array<i64: 128, 128>}, {transform_indices = @transform_2, window_bounds = array<i64: 1, 128>}, {transform_indices = @transform_3, window_bounds = array<i64: 16, 128>}]} {
    %c0_i32 = arith.constant 0 : i32
    %0 = arith.cmpi eq, %arg2, %c0_i32 : i32
    %1 = arith.extui %0 : i1 to i32
    %c0_i32_0 = arith.constant 0 : i32
    %2 = arith.cmpi ne, %1, %c0_i32_0 : i32
    scf.if %2 {
      %cst_10 = arith.constant 0.000000e+00 : f32
      %13 = vector.broadcast %cst_10 : f32 to vector<16x128xf32>
      %c0_11 = arith.constant 0 : index
      %c0_12 = arith.constant 0 : index
      %14 = vector.load %arg7[%c0_11, %c0_12] : memref<16x128xf32, #tpu.memory_space<vmem>>, vector<16x128xf32>
      tpu.vector_store %arg7[%c0_11, %c0_12], %13 {strides = array<i32>} : memref<16x128xf32, #tpu.memory_space<vmem>>, vector<16x128xf32>,
    } else {
    }
    %c0 = arith.constant 0 : index
    %c0_1 = arith.constant 0 : index
    %3 = vector.load %arg4[%c0, %c0_1] : memref<128x128xbf16, #tpu.memory_space<vmem>>, vector<128x128xbf16>
    %4 = arith.extf %3 : vector<128x128xbf16> to vector<128x128xf32>
    %c0_2 = arith.constant 0 : index
    %c0_3 = arith.constant 0 : index
    %5 = vector.load %arg7[%c0_2, %c0_3] : memref<16x128xf32, #tpu.memory_space<vmem>>, vector<16x128xf32>
    %c0_4 = arith.constant 0 : index
    %c0_5 = arith.constant 0 : index
    %6 = vector.load %arg3[%c0_4, %c0_5] : memref<16x128xf32, #tpu.memory_space<vmem>>, vector<16x128xf32>
    %cst = arith.constant dense<0.000000e+00> : vector<16x128xf32>
    %7 = tpu.matmul %6, %4, %cst {dimension_numbers = #tpu.dot_dimension_numbers<[1], [0], [0], [1], [0, 0, 1, 1], [], []>} : vector<16x128xf32>, vector<128x128xf32>, vector<16x128xf32> -> vector<16x128xf32>
    %8 = arith.addf %5, %7 : vector<16x128xf32>
    %c0_6 = arith.constant 0 : index
    %c0_7 = arith.constant 0 : index
    %9 = vector.load %arg7[%c0_6, %c0_7] : memref<16x128xf32, #tpu.memory_space<vmem>>, vector<16x128xf32>
    tpu.vector_store %arg7[%c0_6, %c0_7], %8 {strides = array<i32>} : memref<16x128xf32, #tpu.memory_space<vmem>>, vector<16x128xf32>,
    %c0_i32_8 = arith.constant 0 : i32
    %10 = arith.cmpi eq, %arg2, %c0_i32_8 : i32
    %11 = arith.extui %10 : i1 to i32
    %c0_i32_9 = arith.constant 0 : i32
    %12 = arith.cmpi ne, %11, %c0_i32_9 : i32
    scf.if %12 {
      %c0_10 = arith.constant 0 : index
      %c0_11 = arith.constant 0 : index
      %13 = vector.load %arg7[%c0_10, %c0_11] : memref<16x128xf32, #tpu.memory_space<vmem>>, vector<16x128xf32>
      %c0_12 = arith.constant 0 : index
      %c0_13 = arith.constant 0 : index
      %14 = vector.load %arg5[%c0_12, %c0_13] : memref<1x128xf32, #tpu.memory_space<vmem>>, vector<1x128xf32>
      %15 = vector.broadcast %14 : vector<1x128xf32> to vector<16x128xf32>
      %16 = arith.addf %13, %15 : vector<16x128xf32>
      %c0_14 = arith.constant 0 : index
      %c0_15 = arith.constant 0 : index
      %17 = vector.load %arg6[%c0_14, %c0_15] : memref<16x128xf32, #tpu.memory_space<vmem>>, vector<16x128xf32>
      tpu.vector_store %arg6[%c0_14, %c0_15], %16 {strides = array<i32>} : memref<16x128xf32, #tpu.memory_space<vmem>>, vector<16x128xf32>,
    } else {
    }
    return
  }
  func.func @transform_0(%arg0: i32, %arg1: i32, %arg2: i32) -> (i32, i32) {
    %c0_i32 = arith.constant 0 : i32
    return %arg0, %arg2 : i32, i32
  }
  func.func @transform_1(%arg0: i32, %arg1: i32, %arg2: i32) -> (i32, i32) {
    %c0_i32 = arith.constant 0 : i32
    return %arg2, %arg1 : i32, i32
  }
  func.func @transform_2(%arg0: i32, %arg1: i32, %arg2: i32) -> (i32, i32) {
    %c0_i32 = arith.constant 0 : i32
    %c0_i32_0 = arith.constant 0 : i32
    return %c0_i32, %arg1 : i32, i32
  }
  func.func @transform_3(%arg0: i32, %arg1: i32, %arg2: i32) -> (i32, i32) {
    %c0_i32 = arith.constant 0 : i32
    return %arg0, %arg1 : i32, i32
  }
}

</mosaic_0001>

<bundles_post_ra>
// kernel: tpu_custom_call.1
= control target key start
LH: loop header
LB: loop body
LE: loop exit
PB: predicated region body
PF: predicated region fallthrough
CT: control target
= control target key end

     0   :  { %8 = vsyncpa [#allocation4], 0  ;;  %s474_s0 = inlined_call_operand.hbm [shape: f32[16,128], index: 0, kind: input, shape index: {}]   ;;  %s475_s1 = inlined_call_operand.hbm [shape: bf16[128,128], index: 1, kind: input, shape index: {}]   ;;  %s476_s2 = inlined_call_operand.vmem [shape: f32[1,128], index: 2, kind: input, shape index: {}]   ;;  %s477_s3 = inlined_call_operand.hbm [shape: f32[16,128], index: 3, kind: output, shape index: {}]  }
   0x1   :  { %9 = vsyncpa [#allocation7], 0 }
   0x2   :  { %10 = vsyncpa [#allocation5], 0  ;;  %s402_s12 = smov [#allocation3]   ;;  %s330_s16 = scalar_lea.hbm %s474_s0, 256 }
   0x3   :  { %s16_s13 = sshll.u32 %s402_s12, 4  ;;  %p331_p0 = scmp.ne.s32.totalorder %s474_s0, %s330_s16  ;;  %s17_s13 = int_to_ptr.vmem [resolvable:$true] %s16_s13 }
   0x4   :  { %p334_p1 = scmp.lt.u32.totalorder %s330_s16, %s474_s0 }
   0x6   :  { %p336_p2 = pnand %p334_p1, %p331_p0 }
   0x8   :  { %339 = shalt.err (!%p336_p2)
}
   0x9   :  { %s340_s21 = scalar_lea.vmem %s17_s13, 256  ;;  %p345_p4 = scmp.lt.s32.totalorder %s17_s13, %s17_s13 }
   0xa   :  { %p341_p3 = scmp.ne.s32.totalorder %s17_s13, %s340_s21  ;;  %p346_p5 = scmp.lt.s32.totalorder %s340_s21, %s340_s21 }
   0xc   :  { %p347_p6 = por %p346_p5, %p345_p4 }
   0xe   :  { %p348_p7 = pnand %p347_p6, %p341_p3 }
  0x10   :  { %351 = shalt.err (!%p348_p7)
}
  0x11   :  { %s403_s22 = smov 128   ;;  %s404_s23 = smov 8  }
  0x12   :  { %22 = dma.hbm_to_vmem [thread:$0]  %s474_s0, 256, %s17_s13, [#allocation4], %s403_s22, %s403_s22, %s404_s23  }
  0x13   :  { %s405_s26 = smov [#allocation6]   ;;  %s352_s30 = scalar_lea.hbm %s475_s1, 1024 }
  0x14   :  { %s28_s27 = sshll.u32 %s405_s26, 4  ;;  %p353_p8 = scmp.ne.s32.totalorder %s475_s1, %s352_s30  ;;  %s29_s27 = int_to_ptr.vmem [resolvable:$true] %s28_s27 }
  0x15   :  { %p356_p9 = scmp.lt.u32.totalorder %s352_s30, %s475_s1 }
  0x17   :  { %p358_p10 = pnand %p356_p9, %p353_p8 }
  0x19   :  { %361 = shalt.err (!%p358_p10)
}
  0x1a   :  { %s362_s8 = scalar_lea.vmem %s29_s27, 1024  ;;  %p367_p12 = scmp.lt.s32.totalorder %s29_s27, %s29_s27 }
  0x1b   :  { %p363_p11 = scmp.ne.s32.totalorder %s29_s27, %s362_s8  ;;  %p368_p13 = scmp.lt.s32.totalorder %s362_s8, %s362_s8 }
  0x1d   :  { %p369_p0 = por %p368_p13, %p367_p12 }
  0x1f   :  { %p370_p1 = pnand %p369_p0, %p363_p11 }
  0x21   :  { %373 = shalt.err (!%p370_p1)
}
  0x22   :  { %s406_s0 = smov 64   ;;  %s407_s9 = smov 4  }
  0x23   :  { %34 = dma.hbm_to_vmem [thread:$0]  %s475_s1, 1024, %s29_s27, [#allocation7], %s406_s0, %s406_s0, %s407_s9  }
  0x24   :  { %396 = dma.done.wait [#allocation4], 256  }
  0x25   :  { %397 = vsyncadd [#allocation4], 4294967040 }
  0x26   :  { %398 = dma.done.wait [#allocation7], 1024  }
  0x27   :  { %399 = vsyncadd [#allocation7], 4294966272  ;;  %v200_v0 = vld [vmem:[#allocation6] sm:$0xff]   ;;  %v231_v1 = vld [vmem:[#allocation6 + $0x8] sm:$0xff]   ;;  %s408_s13 = smov [#allocation8]  }
  0x28   :  { %292 = vmatprep.subr.bf16.mxu0 %v200_v0  ;;  %v83_v2 = vld [vmem:[#allocation3] sm:$0xff]  ;;  %v233_v4 = vld [vmem:[#allocation6 + $0x18] sm:$0xff]   ;;  %v234_v5 = vld [vmem:[#allocation6 + $0x20] sm:$0xff]   ;;  %s185_s14 = sshll.u32 %s408_s13, 4  ;;  %s186_s14 = int_to_ptr.vmem [resolvable:$true] %s185_s14 }
  0x29   :  { %294 = vmatpush3.bf16.msra.mxu0 %v200_v0  ;;  %288 = vmatprep.mubr.f32.mxu0 %v83_v2  ;;  %v232_v3 = vld [vmem:[#allocation6 + $0x10] sm:$0xff]   ;;  %v235_v6 = vld [vmem:[#allocation6 + $0x28] sm:$0xff]   ;;  %v237_v8 = vld [vmem:[#allocation6 + $0x38] sm:$0xff]   ;;  %s374_s15 = scalar_lea.vmem %s186_s14, 256  ;;  %p379_p3 = scmp.lt.s32.totalorder %s186_s14, %s186_s14 }
  0x2a   :  { %296 = vmatprep.subr.bf16.mxu0 %v231_v1  ;;  %v236_v7 = vld [vmem:[#allocation6 + $0x30] sm:$0xff]   ;;  %v84_v9 = vld [vmem:[#allocation3 + $0x8] sm:$0xff]  ;;  %p375_p2 = scmp.ne.s32.totalorder %s186_s14, %s374_s15  ;;  %p380_p4 = scmp.lt.s32.totalorder %s374_s15, %s374_s15 }
  0x2b   :  { %v198_v10 = vld [vmem:[%s476_s2] ss:$0 sm:$0xff] }
  0x2c   :  { %p381_p5 = por %p380_p4, %p379_p3 }
  0x2d   :  { %298 = vmatpush3.bf16.msra.mxu0 %v231_v1 }
  0x2e   :  { %300 = vmatprep.subr.bf16.mxu0 %v232_v3  ;;  %p382_p6 = pnand %p381_p5, %p375_p2 }
  0x31   :  { %302 = vmatpush3.bf16.msra.mxu0 %v232_v3 }
  0x32   :  { %304 = vmatprep.subr.bf16.mxu0 %v233_v4 }
  0x35   :  { %306 = vmatpush3.bf16.msra.mxu0 %v233_v4 }
  0x36   :  { %308 = vmatprep.subr.bf16.mxu0 %v234_v5 }
  0x39   :  { %310 = vmatpush3.bf16.msra.mxu0 %v234_v5 }
  0x3a   :  { %312 = vmatprep.subr.bf16.mxu0 %v235_v6 }
  0x3d   :  { %314 = vmatpush3.bf16.msra.mxu0 %v235_v6 }
  0x3e   :  { %316 = vmatprep.subr.bf16.mxu0 %v236_v7 }
  0x41   :  { %318 = vmatpush3.bf16.msra.mxu0 %v236_v7 }
  0x42   :  { %320 = vmatprep.subr.bf16.mxu0 %v237_v8 }
  0x45   :  { %322 = vmatpush3.bf16.msra.mxu0 %v237_v8 }
  0x48   :  { %289 = vmatmul.mubr.f32.vlgmr.msra.gmra.mrb[0].mxu0 %v84_v9 }
 0x11b   :  { %v290_v11 = vpop.f32.mrb[0].mxu0 }
 0x11c   :  { %v177_v12 = vadd.f32 %v290_v11, %v198_v10  ;;  %v151_v13 = vpop.f32.mrb[1].mxu0 }
 0x11d   :  { %v176_v14 = vadd.f32 %v198_v10, %v151_v13 }
 0x11e   :  { %179 = vst [vmem:[#allocation8 + $0x8] sm:$0xff] %v177_v12 }
 0x11f   :  { %178 = vst [vmem:[#allocation8] sm:$0xff] %v176_v14 }
 0x120   :  { %385 = shalt.err (!%p382_p6)
}
 0x121   :  { %s386_s2 = scalar_lea.hbm %s477_s3, 256 }
 0x122   :  { %p387_p7 = scmp.ne.s32.totalorder %s477_s3, %s386_s2  ;;  %p390_p8 = scmp.lt.u32.totalorder %s386_s2, %s477_s3 }
 0x124   :  { %p392_p9 = pnand %p390_p8, %p387_p7 }
 0x126   :  { %395 = shalt.err (!%p392_p9)
}
 0x127   :  { %191 = dma.vmem_to_hbm [thread:$0]  %s186_s14, 256, %s477_s3, [#allocation5], %s403_s22, %s403_s22, %s404_s23  }
 0x128   :  { %400 = dma.done.wait [#allocation5], 256  }
 0x129   :  { %401 = vsyncadd [#allocation5], 4294967040 }
 0x12a   :  { %195 = vsyncpa [#allocation4], 1 }
 0x12b   :  { %196 = vsyncpa [#allocation7], 1 }
 0x12c   :  { %197 = vsyncpa [#allocation5], 1 }

</bundles_post_ra>
